<compile_context>
chip_gen: v5e
topology: v5e:2x2
jax: 0.10.0
libtpu: 0.0.40
codegen_flags: <defaults>
</compile_context>

<pallas_src>
import functools

import jax
import jax.numpy as jnp
from jax.experimental import pallas as pl
from jax.experimental.pallas import tpu as pltpu


def _round_up(x, m):
    return ((x + m - 1) // m) * m


def _overall_error_kernel(yhat_ref, y_ref, out_ref, *, eps, n_rows, tm, mask_tail):
    p = pl.program_id(0)           # parallel chunk (megacore axis)
    i = pl.program_id(1)           # row-tile step within the chunk (reduction axis)
    s = pl.num_programs(1)

    # The output block (1, tm, 1) is resident across the inner ("arbitrary")
    # axis: use it directly as the per-chunk vector accumulator.
    @pl.when(i == 0)
    def _():
        out_ref[...] = jnp.zeros_like(out_ref)

    diff = yhat_ref[...].astype(jnp.float32) - y_ref[...].astype(jnp.float32)
    row_sum = jnp.sum(diff * diff, axis=1, keepdims=True)             # (tm, 1)
    term = jnp.sqrt(row_sum + jnp.float32(eps))                       # (tm, 1)

    if mask_tail:
        # Zero out rows that are padding (global row index >= true N).
        row_start = (p * s + i) * tm
        row_idx = row_start + jax.lax.broadcasted_iota(jnp.int32, (tm, 1), 0)
        term = jnp.where(row_idx < n_rows, term, jnp.float32(0.0))

    out_ref[0, :, :] += term


def overall_error(yhat, y, *, eps=1e-6, tm=None, target_tile_bytes=2 << 20):
    """Pallas implementation of OverallError.forward. Returns an f32 scalar."""
    assert yhat.shape == y.shape and yhat.ndim == 2
    n, d = yhat.shape

    # ---- tile-size selection: ~target_tile_bytes per (tm, d) f32 input tile.
    if tm is None:
        tm = max(8, (target_tile_bytes // (4 * d)) // 8 * 8)
    tm = min(tm, _round_up(n, 8))
    tm = max(8, (tm // 8) * 8)            # multiple of 8 for sublane tiling

    n_tiles = pl.cdiv(n, tm)
    p_chunks = 2 if n_tiles >= 2 else 1   # feed both TCs on v7x; near-free on 1-TC chips
    s_steps = pl.cdiv(n_tiles, p_chunks)
    n_pad = p_chunks * s_steps * tm

    if n_pad != n:
        pad = n_pad - n
        yhat = jnp.pad(yhat, ((0, pad), (0, 0)))
        y = jnp.pad(y, ((0, pad), (0, 0)))

    kernel = functools.partial(
        _overall_error_kernel, eps=eps, n_rows=n, tm=tm, mask_tail=(n_pad != n))

    cost = pl.CostEstimate(
        flops=3 * n * d + 2 * n,
        transcendentals=n,
        bytes_accessed=2 * n_pad * d * 4 + p_chunks * tm * 4,
    )

    partials = pl.pallas_call(
        kernel,
        out_shape=jax.ShapeDtypeStruct((p_chunks, tm, 1), jnp.float32),
        grid_spec=pltpu.PrefetchScalarGridSpec(
            num_scalar_prefetch=0,
            grid=(p_chunks, s_steps),
            in_specs=[
                pl.BlockSpec((tm, d), lambda p, i: (p * s_steps + i, 0)),
                pl.BlockSpec((tm, d), lambda p, i: (p * s_steps + i, 0)),
            ],
            out_specs=pl.BlockSpec((1, tm, 1), lambda p, i: (p, 0, 0)),
        ),
        compiler_params=pltpu.CompilerParams(
            dimension_semantics=("parallel", "arbitrary"),
            vmem_limit_bytes=32 * 1024 * 1024,
        ),
        cost_estimate=cost,
    )(yhat, y)

    # Tiny final reduce + mean in the wrapper (one XLA op over (P, tm, 1)).
    return jnp.sum(partials) / jnp.float32(n)


def overall_error_ref(yhat, y, eps=1e-6):
    se = (yhat - y) ** 2
    loss = jnp.sqrt(se.sum(axis=1) + eps)
    return loss.mean()


if __name__ == "__main__":
    key = jax.random.PRNGKey(0)

    # Case 1: small shape matching the module's typical use (batch=8, hidden=32).
    k1, k2, k3, k4 = jax.random.split(key, 4)
    yhat1 = jax.random.normal(k1, (8, 32), dtype=jnp.float32)
    y1 = jax.random.normal(k2, (8, 32), dtype=jnp.float32)
    out1 = jax.block_until_ready(overall_error(yhat1, y1))
    ref1 = overall_error_ref(yhat1, y1)
    assert jnp.allclose(out1, ref1, atol=1e-5, rtol=1e-5), (out1, ref1)

    # Case 2: non-multiple batch with a small forced tile to exercise the
    # 2-D grid (parallel chunks + multi-step inner axis) and the tail mask.
    yhat2 = jax.random.normal(k3, (200, 64), dtype=jnp.float32)
    y2 = jax.random.normal(k4, (200, 64), dtype=jnp.float32)
    out2 = jax.block_until_ready(overall_error(yhat2, y2, tm=32))
    ref2 = overall_error_ref(yhat2, y2)
    assert jnp.allclose(out2, ref2, atol=1e-5, rtol=1e-5), (out2, ref2)

    # Case 3: bf16 inputs (kernel accumulates in f32).
    yhat3 = jax.random.normal(k1, (96, 128), dtype=jnp.bfloat16)
    y3 = jax.random.normal(k2, (96, 128), dtype=jnp.bfloat16)
    out3 = jax.block_until_ready(overall_error(yhat3, y3, tm=32))
    ref3 = overall_error_ref(yhat3.astype(jnp.float32), y3.astype(jnp.float32))
    assert jnp.allclose(out3, ref3, atol=1e-2, rtol=1e-2), (out3, ref3)

    print("KERNEL_OK")
</pallas_src>

<mosaic_0001>
module attributes {stable_mosaic.version = 11 : i64} {
  func.func @_overall_error_kernel(%arg0: i32, %arg1: i32, %arg2: memref<8x32xf32, #tpu.memory_space<vmem>>, %arg3: memref<8x32xf32, #tpu.memory_space<vmem>>, %arg4: memref<1x8x1xf32, #tpu.memory_space<vmem>>) attributes {dimension_semantics = [#tpu.dimension_semantics<parallel>, #tpu.dimension_semantics<arbitrary>], iteration_bounds = array<i64: 1, 1>, scalar_prefetch = 0 : i64, scratch_operands = 0 : i64, tpu.core_type = #tpu.core_type<tc>, window_params = [{transform_indices = @transform_0, window_bounds = array<i64: 8, 32>}, {transform_indices = @transform_1, window_bounds = array<i64: 8, 32>}, {transform_indices = @transform_2, window_bounds = array<i64: 1, 8, 1>}]} {
    %c0_i32 = arith.constant 0 : i32
    %0 = arith.cmpi eq, %arg1, %c0_i32 : i32
    %1 = arith.extui %0 : i1 to i32
    %c0_i32_0 = arith.constant 0 : i32
    %2 = arith.cmpi ne, %1, %c0_i32_0 : i32
    scf.if %2 {
      %cst_11 = arith.constant 0.000000e+00 : f32
      %18 = vector.broadcast %cst_11 : f32 to vector<1x8x1xf32>
      %c0_12 = arith.constant 0 : index
      %c0_13 = arith.constant 0 : index
      %c0_14 = arith.constant 0 : index
      %19 = vector.load %arg4[%c0_12, %c0_13, %c0_14] : memref<1x8x1xf32, #tpu.memory_space<vmem>>, vector<1x8x1xf32>
      tpu.vector_store %arg4[%c0_12, %c0_13, %c0_14], %18 {strides = array<i32>} : memref<1x8x1xf32, #tpu.memory_space<vmem>>, vector<1x8x1xf32>,
    } else {
    }
    %c0 = arith.constant 0 : index
    %c0_1 = arith.constant 0 : index
    %3 = vector.load %arg2[%c0, %c0_1] : memref<8x32xf32, #tpu.memory_space<vmem>>, vector<8x32xf32>
    %c0_2 = arith.constant 0 : index
    %c0_3 = arith.constant 0 : index
    %4 = vector.load %arg3[%c0_2, %c0_3] : memref<8x32xf32, #tpu.memory_space<vmem>>, vector<8x32xf32>
    %5 = arith.subf %3, %4 : vector<8x32xf32>
    %6 = arith.mulf %5, %5 : vector<8x32xf32>
    %cst = arith.constant dense<0.000000e+00> : vector<8xf32>
    %7 = vector.multi_reduction <add>, %6, %cst [1] : vector<8x32xf32> to vector<8xf32>
    %8 = vector.shape_cast %7 : vector<8xf32> to vector<8x1xf32>
    %cst_4 = arith.constant 9.99999997E-7 : f32
    %9 = vector.broadcast %cst_4 : f32 to vector<8x1xf32>
    %10 = arith.addf %8, %9 : vector<8x1xf32>
    %11 = math.sqrt %10 : vector<8x1xf32>
    %c0_5 = arith.constant 0 : index
    %c0_6 = arith.constant 0 : index
    %c0_7 = arith.constant 0 : index
    %12 = vector.load %arg4[%c0_5, %c0_6, %c0_7] : memref<1x8x1xf32, #tpu.memory_space<vmem>>, vector<1x8x1xf32>
    %13 = vector.shape_cast %12 : vector<1x8x1xf32> to vector<8x1xf32>
    %14 = arith.addf %13, %11 : vector<8x1xf32>
    %c0_8 = arith.constant 0 : index
    %c0_9 = arith.constant 0 : index
    %c0_10 = arith.constant 0 : index
    %15 = vector.load %arg4[%c0_8, %c0_9, %c0_10] : memref<1x8x1xf32, #tpu.memory_space<vmem>>, vector<1x8x1xf32>
    %16 = vector.shape_cast %15 : vector<1x8x1xf32> to vector<8x1xf32>
    %17 = vector.shape_cast %14 : vector<8x1xf32> to vector<1x8x1xf32>
    tpu.vector_store %arg4[%c0_8, %c0_9, %c0_10], %17 {strides = array<i32>} : memref<1x8x1xf32, #tpu.memory_space<vmem>>, vector<1x8x1xf32>,
    return
  }
  func.func @transform_0(%arg0: i32, %arg1: i32) -> (i32, i32) {
    %c1_i32 = arith.constant 1 : i32
    %0 = arith.muli %arg0, %c1_i32 : i32
    %1 = arith.addi %0, %arg1 : i32
    %c0_i32 = arith.constant 0 : i32
    %c0_i32_0 = arith.constant 0 : i32
    return %1, %c0_i32 : i32, i32
  }
  func.func @transform_1(%arg0: i32, %arg1: i32) -> (i32, i32) {
    %c1_i32 = arith.constant 1 : i32
    %0 = arith.muli %arg0, %c1_i32 : i32
    %1 = arith.addi %0, %arg1 : i32
    %c0_i32 = arith.constant 0 : i32
    %c0_i32_0 = arith.constant 0 : i32
    return %1, %c0_i32 : i32, i32
  }
  func.func @transform_2(%arg0: i32, %arg1: i32) -> (i32, i32, i32) {
    %c0_i32 = arith.constant 0 : i32
    %c0_i32_0 = arith.constant 0 : i32
    %c0_i32_1 = arith.constant 0 : i32
    return %arg0, %c0_i32, %c0_i32_0 : i32, i32, i32
  }
}

</mosaic_0001>

<bundles_post_ra>
// kernel: tpu_custom_call.1
= control target key start
LH: loop header
LB: loop body
LE: loop exit
PB: predicated region body
PF: predicated region fallthrough
CT: control target
= control target key end

     0   :  { %7 = vsyncpa [#allocation3], 0  ;;  %s176_s0 = inlined_call_operand.hbm [shape: f32[8,32], index: 0, kind: input, shape index: {}]   ;;  %s177_s1 = inlined_call_operand.hbm [shape: f32[8,32], index: 1, kind: input, shape index: {}]   ;;  %s178_s2 = inlined_call_operand.vmem [shape: f32[1,8,1], index: 2, kind: output, shape index: {}]  }
   0x1   :  { %s17_s11 = sshll.u32 %s176_s0, 4  ;;  %s18_s11 = int_to_ptr.hbm [resolvable:$true] %s17_s11 }
   0x2   :  { %8 = vsyncpa [#allocation5], 0  ;;  %s141_s12 = smov [#allocation2]   ;;  %s31_s16 = sshll.u32 %s177_s1, 4  ;;  %s32_s16 = int_to_ptr.hbm [resolvable:$true] %s31_s16 }
   0x3   :  { %s19_s13 = sshll.u32 %s141_s12, 4  ;;  %s142_s17 = smov [#allocation4]   ;;  %s20_s13 = int_to_ptr.vmem [resolvable:$true] %s19_s13 }
   0x4   :  { %22 = dma.hbm_to_vmem [thread:$0]  %s18_s11, 128, %s20_s13, [#allocation3]  }
   0x5   :  { %s33_s18 = sshll.u32 %s142_s17, 4  ;;  %s34_s18 = int_to_ptr.vmem [resolvable:$true] %s33_s18 }
   0x6   :  { %36 = dma.hbm_to_vmem [thread:$0]  %s32_s16, 128, %s34_s18, [#allocation5]  }
   0x7   :  { %137 = dma.done.wait [#allocation3], 128  }
   0x8   :  { %138 = vsyncadd [#allocation3], 4294967168 }
   0x9   :  { %139 = dma.done.wait [#allocation5], 128  }
   0xa   :  { %140 = vsyncadd [#allocation5], 4294967168  ;;  %vm51_vm0 = vcmask 7168   ;;  %v143_v0 = vmov 0.0   ;;  %v53_v1 = vld [vmem:[#allocation2] sm:$0xff]  ;;  %v54_v2 = vld [vmem:[#allocation4] sm:$0xff] }
   0xb   :  { %52 = vst.msk [vmem:[%s178_s2] sm:$0xff] %vm51_vm0, %v143_v0  ;;  %v55_v3 = vsub.f32 %v53_v1, %v54_v2  ;;  %vm57_vm1 = vcmask 261120  }
   0xd   :  { %v56_v4 = vmul.f32 %v55_v3, %v55_v3 }
   0xf   :  { %v58_v5 = vsel %vm57_vm1, %v56_v4, 0.0 }
  0x10   :  { %59 = vadd.xlane.f32.xlu0 %v58_v5 }
  0x12   :  { %v74_v16 = vld [vmem:[%s178_s2] sm:$0xff] }
  0x83   :  { %v60_v6 = vpop.xlane.xlu0 %59 }
  0x84   :  { %v61_v7 = vadd.f32 1e-06, %v60_v6 }
  0x86   :  { %87 = vrsqrt.f32 %v61_v7  ;;  %vm69_vm2 = vcmp.eq.f32.partialorder %v61_v7, inf  ;;  %v72_v15 = vand.u32 2147483648, %v61_v7  ;;  %vm71_vm3 = vcmp.eq.f32.partialorder %v61_v7, 0.0 }
  0x8c   :  { %v88_v8 = vpop.eup %87 }
  0x8d   :  { %v63_v9 = vmul.f32 %v88_v8, %v61_v7 }
  0x8f   :  { %v64_v10 = vmul.f32 %v88_v8, %v63_v9 }
  0x91   :  { %v65_v11 = vmul.f32 0.5, %v64_v10 }
  0x93   :  { %v66_v12 = vsub.f32 1.5, %v65_v11 }
  0x95   :  { %v67_v13 = vmul.f32 %v88_v8, %v66_v12 }
  0x97   :  { %v68_v14 = vmul.f32 %v67_v13, %v61_v7 }
  0x99   :  { %v70_v17 = vsel %vm69_vm2, %v61_v7, %v68_v14 }
  0x9a   :  { %v73_v18 = vsel %vm71_vm3, %v72_v15, %v70_v17 }
  0x9b   :  { %v75_v19 = vadd.f32 %v74_v16, %v73_v18 }
  0x9d   :  { %77 = vst.msk [vmem:[%s178_s2] sm:$0xff] %vm51_vm0, %v75_v19 }
  0x9e   :  { %82 = vsyncpa [#allocation3], 1 }
  0x9f   :  { %83 = vsyncpa [#allocation5], 1 }

</bundles_post_ra>
